<compile_context>
chip_gen: v7x
topology: tpu7x:2x2x1
jax: 0.10.0
libtpu: 0.0.40
codegen_flags: <defaults>
</compile_context>

<pallas_src>
import functools

import jax
import jax.numpy as jnp
from jax.experimental import pallas as pl
from jax.experimental.pallas import tpu as pltpu

C_IN = 4     # input image channels
C_OUT = 8    # synthetic "layer" feature channels

_MAX_TILE_P = 131072   # upper bound on pixels per tile (multiple of 128)


def _vmem_budget_bytes():
    """Per-generation VMEM budget: half of physical VMEM, capped at 64 MiB.

    v5e/v6e (128 MiB) -> 64 MiB; v7x (64 MiB) -> 32 MiB.
    """
    cap = 128 * 1024 * 1024
    try:
        cap = int(getattr(pltpu.get_tpu_info(), "vmem_capacity_bytes", cap))
    except Exception:
        pass
    return min(cap // 2, 64 * 1024 * 1024)


def _pick_tile_p(p_total, bytes_per_pixel, vmem_budget):
    """Largest lane-aligned pixel tile whose buffers use <= half the budget."""
    cap = (vmem_budget // 2) // bytes_per_pixel
    cap = max(128, (cap // 128) * 128)
    cap = min(cap, _MAX_TILE_P)
    return p_total if p_total <= cap else cap


def _conv1x1(x, w):
    # x: (C_IN, P), w: (C_OUT, C_IN) -> (C_OUT, P).  The tiny K=C_IN=4
    # contraction runs as unrolled VPU multiply-adds with pixels kept on the
    # 128-lane axis (no MXU, no NCHW->NHWC transposes).
    # TODO(synk): stride-0 broadcast loads (x_ref[pl.ds(ci, C_OUT, stride=0)])
    # would move the (1,P)->(C_OUT,P) sublane broadcasts off the XLU path.
    feat = w[:, 0:1] * x[0:1, :]
    for ci in range(1, C_IN):
        feat = feat + w[:, ci:ci + 1] * x[ci:ci + 1, :]
    return feat


# ---------------------------------------------------------------------------
# Synthetic FeatureMapExtractor: 1x1 conv (over channels) + ReLU, lane-dense
# ---------------------------------------------------------------------------
def _feat_kernel(x_ref, w_ref, o_ref):
    # x_ref: (C_IN, TILE_P), w_ref: (C_OUT, C_IN), o_ref: (C_OUT, TILE_P)
    o_ref[...] = jnp.maximum(_conv1x1(x_ref[...], w_ref[...]), 0.0)


def feature_map(image_nchw, w):
    """get_feature_map(image, layer) stand-in: 1x1 conv + ReLU, NCHW in/out."""
    n, c, h, wd = image_nchw.shape
    assert c == C_IN
    p_total = h * wd
    budget = _vmem_budget_bytes()
    # double-buffered f32 input (4ch) + output (8ch) tiles
    tile_p = _pick_tile_p(p_total, 2 * 4 * (C_IN + C_OUT), budget)
    x = image_nchw.reshape(n, C_IN, p_total).astype(jnp.float32)

    feats = pl.pallas_call(
        _feat_kernel,
        out_shape=jax.ShapeDtypeStruct((n, C_OUT, p_total), jnp.float32),
        grid_spec=pltpu.PrefetchScalarGridSpec(
            num_scalar_prefetch=0,
            grid=(n, pl.cdiv(p_total, tile_p)),
            in_specs=[
                pl.BlockSpec((None, C_IN, tile_p), lambda b, p: (b, 0, p)),
                pl.BlockSpec((C_OUT, C_IN), lambda b, p: (0, 0)),
            ],
            out_specs=pl.BlockSpec((None, C_OUT, tile_p),
                                   lambda b, p: (b, 0, p)),
        ),
        compiler_params=pltpu.CompilerParams(
            dimension_semantics=("parallel", "parallel"),
            vmem_limit_bytes=budget),
    )(x, w.astype(jnp.float32))
    return feats.reshape(n, C_OUT, h, wd)


# ---------------------------------------------------------------------------
# Fused: gen feat + content feat (both conv+ReLU) + sum((gen - content)**2)/2
# ---------------------------------------------------------------------------
def _fused_loss_kernel(x_ref, c_ref, w_ref, o_ref, acc_ref, *,
                       p_total, tile_p, tiles_per_split):
    # x_ref / c_ref: (C_IN, TILE_P) gen / content image pixel tiles.
    # o_ref: (1, 128) per-(split, batch) partial; acc_ref: (1, TILE_P) VMEM.
    s = pl.program_id(0)
    p = pl.program_id(2)

    @pl.when(p == 0)
    def _():
        acc_ref[...] = jnp.zeros_like(acc_ref)

    w = w_ref[...]
    gen_feat = jnp.maximum(_conv1x1(x_ref[...], w), 0.0)
    con_feat = jnp.maximum(_conv1x1(c_ref[...], w), 0.0)
    d = gen_feat - con_feat

    # Intended (unclamped) pixel offset of this tile.  The index_map clamps
    # the DMA in-bounds; any "duplicate" tile past the end is masked to zero.
    start = (s * tiles_per_split + p) * tile_p
    is_full = start + tile_p <= p_total

    @pl.when(is_full)
    def _():
        # Fast path: pure VPU square + sublane(XLU) reduce into (1, TILE_P).
        acc_ref[...] += jnp.sum(d * d, axis=0, keepdims=True)

    @pl.when(jnp.logical_not(is_full))
    def _():
        # Slow path (tail / duplicate tile): mask d BEFORE squaring so garbage
        # (even NaN/Inf) read from out-of-range lanes never propagates.
        lane = jax.lax.broadcasted_iota(jnp.int32, d.shape, 1)
        dm = jnp.where(start + lane < p_total, d, 0.0)
        acc_ref[...] += jnp.sum(dm * dm, axis=0, keepdims=True)

    @pl.when(p == pl.num_programs(2) - 1)
    def _():
        # Single cross-lane reduce in the epilogue; `* 0.5` is `x /= 2`.
        o_ref[...] = jnp.full(o_ref.shape, jnp.sum(acc_ref[...]) * 0.5,
                              dtype=o_ref.dtype)


def content_loss_fused(gen_image, content_image, w):
    """sum((relu(conv(gen)) - relu(conv(content)))**2) / 2 in one fused pass."""
    n, c, h, wd = gen_image.shape
    assert c == C_IN and content_image.shape == gen_image.shape
    p_total = h * wd
    budget = _vmem_budget_bytes()
    # double-buffered f32 gen + content tiles + (1, tile_p) f32 accumulator
    tile_p = _pick_tile_p(p_total, 2 * (2 * C_IN * 4) + 4, budget)

    total_tiles = pl.cdiv(p_total, tile_p)
    n_split = 2 if total_tiles >= 2 else 1     # pixel split -> both v7x TCs
    tiles_per_split = pl.cdiv(total_tiles, n_split)

    x = gen_image.reshape(n, C_IN, p_total).astype(jnp.float32)
    cimg = content_image.reshape(n, C_IN, p_total).astype(jnp.float32)
    # TODO(synk): if inputs may be bf16, stream them as bf16 through HBM and
    # upcast right after load (halves HBM bytes; biggest win on v5e).

    def img_map(s, b, p):
        # Clamp so the DMA stays in bounds when total_tiles doesn't divide
        # evenly across splits; the kernel masks the duplicate tile to zero.
        return (b, 0, jnp.minimum(s * tiles_per_split + p, total_tiles - 1))

    kernel = functools.partial(_fused_loss_kernel, p_total=p_total,
                               tile_p=tile_p, tiles_per_split=tiles_per_split)

    partials = pl.pallas_call(
        kernel,
        out_shape=jax.ShapeDtypeStruct((n_split, n, 1, 128), jnp.float32),
        grid_spec=pltpu.PrefetchScalarGridSpec(
            num_scalar_prefetch=0,
            grid=(n_split, n, tiles_per_split),
            in_specs=[
                pl.BlockSpec((None, C_IN, tile_p), img_map),
                pl.BlockSpec((None, C_IN, tile_p), img_map),
                pl.BlockSpec((C_OUT, C_IN), lambda s, b, p: (0, 0)),
            ],
            out_specs=pl.BlockSpec((None, None, 1, 128),
                                   lambda s, b, p: (s, b, 0, 0)),
            scratch_shapes=[pltpu.VMEM((1, tile_p), jnp.float32)],
        ),
        compiler_params=pltpu.CompilerParams(
            dimension_semantics=("parallel", "parallel", "arbitrary"),
            vmem_limit_bytes=budget),
    )(x, cimg, w.astype(jnp.float32))

    # Tiny (n_split * N)-way combine of partials (already halved in-kernel).
    return jnp.sum(partials[:, :, 0, 0])


# ---------------------------------------------------------------------------
# ContentLoss module analogue
# ---------------------------------------------------------------------------
class ContentLossPallas:
    def __init__(self, w, content_image):
        self.w = w
        self.content_image = content_image
        # Parity with the PyTorch module, which caches the content feature
        # map.  The fused loss recomputes relu(conv(content)) in-kernel from
        # the 4-channel content image instead of streaming this 8-channel f32
        # map: identical values, 2/3 of the HBM bytes per grid step.
        self.content_feat_map = feature_map(content_image, w)

    def __call__(self, gen_image):
        return content_loss_fused(gen_image, self.content_image, self.w)


if __name__ == "__main__":
    key = jax.random.PRNGKey(0)
    k_w, k_content, k_gen = jax.random.split(key, 3)

    # Deterministic weights for the synthetic layer and small NCHW images.
    w = jax.random.normal(k_w, (C_OUT, C_IN), dtype=jnp.float32) * 0.1
    content_image = jax.random.normal(k_content, (2, C_IN, 16, 16),
                                      dtype=jnp.float32)
    gen_image = jax.random.normal(k_gen, (2, C_IN, 16, 16), dtype=jnp.float32)

    module = ContentLossPallas(w, content_image)
    loss = jax.block_until_ready(module(gen_image))

    # Pure-JAX reference of the same forward pass.
    def ref_feat(img):
        x = img.reshape(img.shape[0], C_IN, -1).astype(jnp.float32)
        return jnp.maximum(jnp.einsum("oc,ncp->nop", w, x), 0.0)

    ref = jnp.sum((ref_feat(gen_image) - ref_feat(content_image)) ** 2) / 2.0
    assert jnp.allclose(loss, ref, rtol=1e-5, atol=1e-5), (loss, ref)

    # Cross-check the standalone extractor (cached content feature map) too.
    feat = jax.block_until_ready(module.content_feat_map)
    assert jnp.allclose(feat.reshape(2, C_OUT, -1), ref_feat(content_image),
                        rtol=1e-5, atol=1e-5)

    print("KERNEL_OK")
</pallas_src>

<mosaic_0001>
module attributes {stable_mosaic.version = 11 : i64} {
  func.func @_feat_kernel(%arg0: i32, %arg1: i32, %arg2: memref<1x4x256xf32, #tpu.memory_space<vmem>>, %arg3: memref<8x4xf32, #tpu.memory_space<vmem>>, %arg4: memref<1x8x256xf32, #tpu.memory_space<vmem>>) attributes {dimension_semantics = [#tpu.dimension_semantics<parallel>, #tpu.dimension_semantics<parallel>], iteration_bounds = array<i64: 2, 1>, scalar_prefetch = 0 : i64, scratch_operands = 0 : i64, tpu.core_type = #tpu.core_type<tc>, window_params = [{transform_indices = @transform_0, window_bounds = array<i64: 1, 4, 256>}, {pipeline_mode = #tpu.pipeline_mode<synchronous>, transform_indices = @transform_1, window_bounds = array<i64: 8, 4>}, {transform_indices = @transform_2, window_bounds = array<i64: 1, 8, 256>}]} {
    %c0 = arith.constant 0 : index
    %c0_0 = arith.constant 0 : index
    %c0_1 = arith.constant 0 : index
    %0 = vector.load %arg2[%c0, %c0_0, %c0_1] : memref<1x4x256xf32, #tpu.memory_space<vmem>>, vector<1x4x256xf32>
    %1 = vector.shape_cast %0 : vector<1x4x256xf32> to vector<4x256xf32>
    %c0_2 = arith.constant 0 : index
    %c0_3 = arith.constant 0 : index
    %2 = vector.load %arg3[%c0_2, %c0_3] : memref<8x4xf32, #tpu.memory_space<vmem>>, vector<8x4xf32>
    %3 = vector.extract_strided_slice %2 {offsets = [0, 0], sizes = [8, 1], strides = [1, 1]} : vector<8x4xf32> to vector<8x1xf32>
    %4 = vector.extract_strided_slice %1 {offsets = [0, 0], sizes = [1, 256], strides = [1, 1]} : vector<4x256xf32> to vector<1x256xf32>
    %5 = vector.broadcast %3 : vector<8x1xf32> to vector<8x256xf32>
    %6 = vector.broadcast %4 : vector<1x256xf32> to vector<8x256xf32>
    %7 = arith.mulf %5, %6 : vector<8x256xf32>
    %8 = vector.extract_strided_slice %2 {offsets = [0, 1], sizes = [8, 1], strides = [1, 1]} : vector<8x4xf32> to vector<8x1xf32>
    %9 = vector.extract_strided_slice %1 {offsets = [1, 0], sizes = [1, 256], strides = [1, 1]} : vector<4x256xf32> to vector<1x256xf32>
    %10 = vector.broadcast %8 : vector<8x1xf32> to vector<8x256xf32>
    %11 = vector.broadcast %9 : vector<1x256xf32> to vector<8x256xf32>
    %12 = arith.mulf %10, %11 : vector<8x256xf32>
    %13 = arith.addf %7, %12 : vector<8x256xf32>
    %14 = vector.extract_strided_slice %2 {offsets = [0, 2], sizes = [8, 1], strides = [1, 1]} : vector<8x4xf32> to vector<8x1xf32>
    %15 = vector.extract_strided_slice %1 {offsets = [2, 0], sizes = [1, 256], strides = [1, 1]} : vector<4x256xf32> to vector<1x256xf32>
    %16 = vector.broadcast %14 : vector<8x1xf32> to vector<8x256xf32>
    %17 = vector.broadcast %15 : vector<1x256xf32> to vector<8x256xf32>
    %18 = arith.mulf %16, %17 : vector<8x256xf32>
    %19 = arith.addf %13, %18 : vector<8x256xf32>
    %20 = vector.extract_strided_slice %2 {offsets = [0, 3], sizes = [8, 1], strides = [1, 1]} : vector<8x4xf32> to vector<8x1xf32>
    %21 = vector.extract_strided_slice %1 {offsets = [3, 0], sizes = [1, 256], strides = [1, 1]} : vector<4x256xf32> to vector<1x256xf32>
    %22 = vector.broadcast %20 : vector<8x1xf32> to vector<8x256xf32>
    %23 = vector.broadcast %21 : vector<1x256xf32> to vector<8x256xf32>
    %24 = arith.mulf %22, %23 : vector<8x256xf32>
    %25 = arith.addf %19, %24 : vector<8x256xf32>
    %cst = arith.constant 0.000000e+00 : f32
    %26 = vector.broadcast %cst : f32 to vector<8x256xf32>
    %27 = arith.maximumf %25, %26 : vector<8x256xf32>
    %c0_4 = arith.constant 0 : index
    %c0_5 = arith.constant 0 : index
    %c0_6 = arith.constant 0 : index
    %28 = vector.load %arg4[%c0_4, %c0_5, %c0_6] : memref<1x8x256xf32, #tpu.memory_space<vmem>>, vector<1x8x256xf32>
    %29 = vector.shape_cast %28 : vector<1x8x256xf32> to vector<8x256xf32>
    %30 = vector.shape_cast %27 : vector<8x256xf32> to vector<1x8x256xf32>
    tpu.vector_store %arg4[%c0_4, %c0_5, %c0_6], %30 {strides = array<i32>} : memref<1x8x256xf32, #tpu.memory_space<vmem>>, vector<1x8x256xf32>,
    return
  }
  func.func @transform_0(%arg0: i32, %arg1: i32) -> (i32, i32, i32) {
    %c0_i32 = arith.constant 0 : i32
    %c0_i32_0 = arith.constant 0 : i32
    return %arg0, %c0_i32, %arg1 : i32, i32, i32
  }
  func.func @transform_1(%arg0: i32, %arg1: i32) -> (i32, i32) {
    %c0_i32 = arith.constant 0 : i32
    %c0_i32_0 = arith.constant 0 : i32
    %c0_i32_1 = arith.constant 0 : i32
    return %c0_i32, %c0_i32_0 : i32, i32
  }
  func.func @transform_2(%arg0: i32, %arg1: i32) -> (i32, i32, i32) {
    %c0_i32 = arith.constant 0 : i32
    %c0_i32_0 = arith.constant 0 : i32
    return %arg0, %c0_i32, %arg1 : i32, i32, i32
  }
}

</mosaic_0001>

<bundles_post_ra>
// kernel: tpu_custom_call.1
= control target key start
LH: loop header
LB: loop body
LE: loop exit
PB: predicated region body
PF: predicated region fallthrough
CT: control target
= control target key end

     0   :  { %7 = vsyncpa [#allocation3], 0  ;;  %s900_s0 = inlined_call_operand.hbm [shape: f32[2,4,256], index: 0, kind: input, shape index: {}]   ;;  %s901_s1 = inlined_call_operand.hbm [shape: f32[8,4], index: 1, kind: input, shape index: {}]   ;;  %s902_s2 = inlined_call_operand.hbm [shape: f32[2,8,256], index: 2, kind: output, shape index: {}]  }
   0x1   :  { %9 = vsyncpa [#allocation3 + $0x1], 0 }
   0x2   :  { %10 = vsyncpa [#allocation6], 0 }
   0x3   :  { %11 = vsyncpa [#allocation4], 0 }
   0x4   :  { %13 = vsyncpa [#allocation4 + $0x1], 0  ;;  %s683_s9 = smov 0   ;;  %s685_s10 = smov 0  }
   0x5   :  { %s687_s11 = smov 0   ;;  %s689_s12 = smov 0  }
   0x6   :  { %s691_s13 = smov 0   ;;  %s693_s14 = smov 0  }
   0x7 LB: > { %s414_s15 = sadd.s32 4294967295, %s659_s14   ;;  %s415_s16 = sadd.s32 4294967294, %s659_s14   ;;  %s659_s14 = sphi %s693_s14, %s19_s14   ;;  %s655_s13 = sphi %s691_s13, %s927_s13   ;;  %s651_s12 = sphi %s689_s12, %s926_s12   ;;  %s647_s11 = sphi %s687_s11, %s925_s11   ;;  %s643_s10 = sphi %s685_s10, %s924_s10   ;;  %s639_s9 = sphi %s683_s9, %s923_s9  }
   0x8   : > { %p53_p0 = scmp.ne.s32.totalorder %s643_s10, %s639_s9  ;;  %p717_p1 = scmp.eq.s32.totalorder %s414_s15, 0 }
   0x9   : > { %p721_p2 = scmp.eq.s32.totalorder %s414_s15, 1  ;;  %p106_p3 = scmp.eq.s32.totalorder %s415_s16, 1 }
   0xa   : > { %s907_s17 = scalar_select %p717_p1, 1, 0 }
   0xb   : > { %s908_s18 = scalar_select %p721_p2, 1, 0 }
   0xc   : > { %p727_p4 = por %p717_p1, %p53_p0  ;;  %p416_p5 = scmp.ge.s32.totalorder %s659_s14, 1 }
   0xd   : > { %p732_p6 = por %p106_p3, %p53_p0  ;;  %p113_p7 = scmp.lt.s32.totalorder %s659_s14, 3 }
   0xe   : > { %s909_s19 = scalar_select %p727_p4, 1, 0 }
   0xf   : > { %s910_s20 = scalar_select %p732_p6, 1, 0 }
  0x10   : > { %p737_p8 = pnand %p416_p5, %p113_p7  ;;  %s661_s22 = smov [#allocation5]  }
  0x11   : > { %s126_s23 = sshll.u32 %s661_s22, 4  ;;  %s31_s25 = sadd.s32 1, %s655_s13  ;;  %s127_s23 = int_to_ptr.vmem [resolvable:$true] %s126_s23 }
  0x12   : > { %s911_s21 = scalar_select %p737_p8, 1, 0 }
  0x13   : > { %p441_p10 = pneg %p737_p8  ;;  %s40_s26 = sadd.s32 1, %s647_s11 }
  0x14   : > { %p752_p12 = scmp.ge.s32.totalorder %s31_s25, 2  ;;  %s515_s30 = scalar_lea.hbm %s901_s1, 128 }
  0x15   : > { %p746_p11 = pnand %p441_p10, %p717_p1  ;;  %p516_p13 = scmp.ne.s32.totalorder %s901_s1, %s515_s30 }
  0x16   : > { %s913_s27 = scalar_select %p752_p12, 1, 0 }
  0x17   : > { %p517_p0 = pneg %p746_p11  ;;  %p522_p7 = scmp.lt.u32.totalorder %s515_s30, %s901_s1 }
  0x19   : > { %p518_p3 = pnand %p517_p0, %p516_p13 }
  0x1b   : > { %p519_p5 = pneg %p518_p3 }
  0x1d   : > { %p524_p10 = pnand %p522_p7, %p519_p5 }
  0x1f   : > { %527 = shalt.err (!%p524_p10)
}
  0x20   : > { %s528_s7 = scalar_lea.vmem %s127_s23, 128  ;;  %p536_p4 = scmp.lt.s32.totalorder %s127_s23, %s127_s23 }
  0x21   : > { %p529_p9 = scmp.ne.s32.totalorder %s127_s23, %s528_s7  ;;  %p537_p8 = scmp.lt.s32.totalorder %s528_s7, %s528_s7 }
  0x23   : > { %p531_p6 = pnand %p529_p9, %p517_p0  ;;  %p538_p2 = por %p537_p8, %p536_p4 }
  0x25   : > { %p532_p1 = pneg %p531_p6 }
  0x27   : > { %p539_p12 = pnand %p538_p2, %p532_p1 }
  0x29   : > { %542 = shalt.err (!%p539_p12)
}
  0x2a   : > { %444 = dma.hbm_to_vmem [thread:$0]  (!%p746_p11), %s901_s1, 128, %s127_s23, [#allocation6]  }
  0x2b   : > { %p914_p4 = scmp.ne.s32.totalorder %s913_s27, 0  ;;  %p47_p1 = scmp.ne.s32.totalorder %s647_s11, %s643_s10 }
  0x2c   : > { %p48_p2 = scmp.eq.s32.totalorder %s659_s14, 0  ;;  %p454_p6 = scmp.lt.s32.totalorder %s659_s14, 2 }
  0x2d   : > { %s929_s25 = smov (%p914_p4, %s31_s25), 0  ;;  %p915_p12 = scmp.ne.s32.totalorder %s908_s18, 0 }
  0x2e   : > { %s35_s16 = ssub.s32 %s655_s13, %s929_s25  ;;  %p49_p9 = por %p48_p2, %p47_p1 }
  0x2f   : > { %p38_p8 = scmp.eq.s32.totalorder %s35_s16, 0  ;;  %p784_p13 = por %p915_p12, %p47_p1 }
  0x30   : > { %s137_s24 = sand.u32 1, %s647_s11   ;;  %s431_s27 = sshll.u32 %s655_s13, 7 }
  0x31   : > { %s792_s28 = scalar_select %p38_p8, %s647_s11, %s40_s26  }
  0x32   : > { %s419_s23 = sshll.u32 %s137_s24, 3  ;;  %s798_s3 = scalar_lea.hbm %s900_s0, %s431_s27 }
  0x33   : > { %s141_s18 = scalar_lea.vmem [#allocation2], %s419_s23  ;;  %p802_p11 = pnand %p454_p6, %p49_p9 }
  0x34   : > { %s151_s4 = sshll.u32 %s141_s18, 4  ;;  %s138_s26 = scalar_lea.sflag [#allocation3], %s137_s24  ;;  %s800_s4 = int_to_ptr.vmem [resolvable:$true] %s151_s4 }
  0x35   : > { %s543_s6 = scalar_lea.hbm %s798_s3, 128  ;;  %p545_p3 = pneg %p802_p11 }
  0x36   : > { %p544_p0 = scmp.ne.s32.totalorder %s798_s3, %s543_s6  ;;  %s548_s15 = scalar_lea.hbm %s900_s0, 256 }
  0x37   : > { %p549_p10 = scmp.lt.u32.totalorder %s798_s3, %s900_s0  ;;  %p550_p4 = scmp.lt.u32.totalorder %s548_s15, %s543_s6 }
  0x38   : > { %p546_p5 = pnand %p545_p3, %p544_p0  ;;  %p552_p2 = scmp.lt.u32.totalorder %s543_s6, %s798_s3 }
  0x39   : > { %p551_p1 = por %p550_p4, %p549_p10 }
  0x3a   : > { %p547_p7 = pneg %p546_p5 }
  0x3b   : > { %p553_p6 = por %p552_p2, %p551_p1 }
  0x3d   : > { %p554_p8 = pnand %p553_p6, %p547_p7 }
  0x3f   : > { %557 = shalt.err (!%p554_p8)
}
  0x40   : > { %s558_s24 = scalar_lea.vmem %s800_s4, 128  ;;  %s662_s27 = smov [#allocation2]  }
  0x41   : > { %p559_p9 = scmp.ne.s32.totalorder %s800_s4, %s558_s24  ;;  %s563_s29 = sshll.u32 %s662_s27, 4  ;;  %s564_s29 = int_to_ptr.vmem [resolvable:$false] %s563_s29 }
  0x42   : > { %s565_s30 = scalar_lea.vmem %s564_s29, 256  ;;  %p566_p5 = scmp.lt.s32.totalorder %s800_s4, %s564_s29 }
  0x43   : > { %p561_p12 = pnand %p559_p9, %p545_p3  ;;  %p567_p10 = scmp.lt.s32.totalorder %s565_s30, %s558_s24 }
  0x45   : > { %p562_p0 = pneg %p561_p12  ;;  %p568_p4 = por %p567_p10, %p566_p5 }
  0x47   : > { %p569_p1 = pnand %p568_p4, %p562_p0 }
  0x49   : > { %572 = shalt.err (!%p569_p1)
}
  0x4a   : > { %448 = dma.hbm_to_vmem [thread:$0]  (!%p802_p11), %s798_s3, 128, %s800_s4, %s138_s26  }
  0x4b   : > { %p918_p7 = scmp.ne.s32.totalorder %s911_s21, 0 }
  0x4c   : > { %s834_s18 = sand.u32 (!%p918_p7), 1, %s643_s10   ;;  %p919_p3 = scmp.ne.s32.totalorder (!%p918_p7), %s909_s19, 0 }
  0x4d   : > { %160 = sbr.rel (%p918_p7) target bundleno = 247 (0xf7), region = 28  ;;  %s423_s6 = sshll.u32 (!%p918_p7), %s834_s18, 3 }
  0x4e   : > { %s163_s7 = scalar_lea.sflag (!%p918_p7), [#allocation3], %s834_s18  ;;  %s166_s8 = scalar_lea.vmem (!%p918_p7), [#allocation2], %s423_s6 }
  0x54   : > { %626 = dma.done.wait (%p919_p3), %s163_s7, 128  }
  0x55   : > { %628 = vsyncadd (%p919_p3), %s163_s7, 4294967168  ;;  %p920_p2 = scmp.ne.s32.totalorder %s907_s17, 0 }
  0x57   : > { %630 = dma.done.wait (%p920_p2), [#allocation6], 128  }
  0x58   : > { %632 = vsyncadd (%p920_p2), [#allocation6], 4294967168  ;;  %v663_v0 = vmov 0   ;;  %v664_v1 = vmov 2   ;;  %v194_v2 = vld [vmem:[#allocation5] sm:$0xff]  ;;  %v665_v3 = vmov 1   ;;  %v201_v5 = vlaneseq }
  0x59   : > { %510 = vset.pattern.permute.xlu0 %v663_v0  ;;  %512 = vset.pattern.permute.xlu1 %v664_v1  ;;  %v666_v4 = vmov 3   ;;  %v193_v11 = vld [vmem:[%s166_s8] sm:$0xff]  ;;  %s425_s17 = sshll.u32 %s834_s18, 4  ;;  %s432_s19 = sshll.u32 %s651_s12, 8 }
  0x5a   : > { %197 = vperm.xlu0 %510, %v194_v2   ;;  %248 = vperm.xlu1 %512, %v194_v2   ;;  %v202_v6 = vshrl.u32 %v201_v5, 7  ;;  %s190_s21 = scalar_lea.vmem [#allocation7], %s425_s17  ;;  %s851_s26 = scalar_lea.hbm %s902_s2, %s432_s19 }
  0x5b   : > { %s320_s3 = sshll.u32 %s190_s21, 4  ;;  %s304_s15 = scalar_lea.sflag [#allocation4], %s834_s18  ;;  %s853_s3 = int_to_ptr.vmem [resolvable:$true] %s320_s3 }
  0x5c   : > { %v203_v7 = vsub.s32 0, %v202_v6  ;;  %v207_v8 = vsub.s32 4, %v202_v6  ;;  %v227_v9 = vsub.s32 1, %v202_v6  ;;  %v231_v10 = vsub.s32 5, %v202_v6  ;;  %s573_s12 = scalar_lea.vmem %s853_s3, 256  ;;  %s667_s16 = smov [#allocation7]  }
  0x5d   : > { %v253_v12 = vsub.s32 2, %v202_v6  ;;  %v257_v13 = vsub.s32 6, %v202_v6  ;;  %v279_v14 = vsub.s32 3, %v202_v6  ;;  %v283_v15 = vsub.s32 7, %v202_v6  ;;  %p574_p11 = scmp.ne.s32.totalorder %s853_s3, %s573_s12  ;;  %s577_s23 = sshll.u32 %s667_s16, 4  ;;  %s578_s23 = int_to_ptr.vmem [resolvable:$false] %s577_s23 }
  0x5e   : > { %511 = vset.pattern.permute.xlu0 %v665_v3  ;;  %513 = vset.pattern.permute.xlu1 %v666_v4  ;;  %v204_v16 = vrot.slane %v193_v11, %v203_v7  ;;  %v208_v17 = vrot.slane %v193_v11, %v207_v8  ;;  %v228_v18 = vrot.slane %v193_v11, %v227_v9  ;;  %s579_s24 = scalar_lea.vmem %s578_s23, 512  ;;  %p580_p9 = scmp.lt.s32.totalorder %s853_s3, %s578_s23 }
  0x5f   : > { %222 = vperm.xlu0 %511, %v194_v2   ;;  %274 = vperm.xlu1 %513, %v194_v2   ;;  %v232_v19 = vrot.slane %v193_v11, %v231_v10  ;;  %v254_v20 = vrot.slane %v193_v11, %v253_v12  ;;  %v258_v21 = vrot.slane %v193_v11, %v257_v13  ;;  %p575_p6 = pnand %p574_p11, %p784_p13  ;;  %p581_p12 = scmp.lt.s32.totalorder %s579_s24, %s573_s12 }
  0x60   : > { %v280_v24 = vrot.slane %v193_v11, %v279_v14  ;;  %v284_v25 = vrot.slane %v193_v11, %v283_v15  ;;  %v214_v26 = vrot.slane %v204_v16, %v203_v7  ;;  %v218_v27 = vrot.slane %v208_v17, %v203_v7 }
  0x61   : > { %v238_v28 = vrot.slane %v228_v18, %v227_v9  ;;  %v242_v29 = vrot.slane %v232_v19, %v227_v9  ;;  %v264_v30 = vrot.slane %v254_v20, %v253_v12  ;;  %v268_v31 = vrot.slane %v258_v21, %v253_v12  ;;  %p576_p8 = pneg %p575_p6  ;;  %p582_p0 = por %p581_p12, %p580_p9 }
  0x62   : > { %v290_v32 = vrot.slane %v280_v24, %v279_v14  ;;  %v294_v33 = vrot.slane %v284_v25, %v279_v14 }
  0x63   : > { %514 = vset.pattern.permute.xlu0 %v666_v4  ;;  %p583_p5 = pnand %p582_p0, %p576_p8 }
  0xd9   : > { %v198_v22 = vpop.permute.xlu0 %197  ;;  %v249_v23 = vpop.permute.xlu1 %248 }
  0xda   : > { %v219_v36 = vmul.f32 %v214_v26, %v198_v22  ;;  %v220_v37 = vmul.f32 %v218_v27, %v198_v22  ;;  %v269_v40 = vmul.f32 %v264_v30, %v249_v23  ;;  %v270_v41 = vmul.f32 %v268_v31, %v249_v23 }
  0xde   : > { %v223_v34 = vpop.permute.xlu0 %222  ;;  %v275_v35 = vpop.permute.xlu1 %274 }
  0xdf   : > { %v243_v38 = vmul.f32 %v238_v28, %v223_v34  ;;  %v244_v39 = vmul.f32 %v242_v29, %v223_v34  ;;  %v295_v44 = vmul.f32 %v290_v32, %v275_v35  ;;  %v296_v45 = vmul.f32 %v294_v33, %v275_v35 }
  0xe1   : > { %v245_v42 = vadd.f32 %v243_v38, %v219_v36  ;;  %v246_v43 = vadd.f32 %v244_v39, %v220_v37 }
  0xe3   : > { %v271_v46 = vadd.f32 %v269_v40, %v245_v42  ;;  %v272_v47 = vadd.f32 %v270_v41, %v246_v43 }
  0xe5   : > { %v297_v48 = vadd.f32 %v295_v44, %v271_v46  ;;  %v298_v49 = vadd.f32 %v296_v45, %v272_v47 }
  0xe7   : > { %v299_v50 = vmax.f32 %v297_v48, 0.0  ;;  %v300_v51 = vmax.f32 %v298_v49, 0.0 }
  0xe9   : > { %301 = vst [vmem:[%s190_s21] sm:$0xff] %v299_v50  ;;  %302 = vst [vmem:[%s190_s21 + $0x8] sm:$0xff] %v300_v51 }
  0xea   : > { %586 = shalt.err (!%p583_p5)
}
  0xeb   : > { %s587_s27 = scalar_lea.hbm %s851_s26, 256  ;;  %s591_s18 = scalar_lea.hbm %s902_s2, 512 }
  0xec   : > { %p588_p10 = scmp.ne.s32.totalorder %s851_s26, %s587_s27  ;;  %p592_p7 = scmp.lt.u32.totalorder %s851_s26, %s902_s2 }
  0xed   : > { %p593_p3 = scmp.lt.u32.totalorder %s591_s18, %s587_s27  ;;  %p595_p11 = scmp.lt.u32.totalorder %s587_s27, %s851_s26 }
  0xee   : > { %p589_p4 = pnand %p588_p10, %p784_p13 }
  0xef   : > { %p594_p2 = por %p593_p3, %p592_p7 }
  0xf0   : > { %p590_p1 = pneg %p589_p4 }
  0xf1   : > { %p596_p6 = por %p595_p11, %p594_p2 }
  0xf3   : > { %p597_p8 = pnand %p596_p6, %p590_p1 }
  0xf5   : > { %600 = shalt.err (!%p597_p8)
}
  0xf6   : > { %439 = dma.vmem_to_hbm [thread:$0]  (%p784_p13), %s853_s3, 256, %s851_s26, %s304_s15  }
  0xf7 PF: > { %s332_s8 = sand.u32 1, %s639_s9   ;;  %p921_p9 = scmp.ne.s32.totalorder %s910_s20, 0 }
  0xf8   : > { %p922_p12 = scmp.ge.s32.totalorder %s659_s14, 2  ;;  %s333_s17 = scalar_lea.sflag [#allocation4], %s332_s8 }
  0xfa   : > { %p450_p0 = pnand %p922_p12, %p921_p9 }
  0xfc   : > { %634 = dma.done.wait (!%p450_p0), %s333_s17, 256  }
  0xfd   : > { %636 = vsyncadd (!%p450_p0), %s333_s17, 4294967040  ;;  %s19_s14 = sadd.s32 1, %s659_s14   ;;  %s923_s9 = smov %s643_s10 }
  0xfe   : > { %p16_p5 = scmp.ge.s32.totalorder %s19_s14, 4   ;;  %s924_s10 = smov %s647_s11 }
  0xff   : > { %s925_s11 = smov %s792_s28  ;;  %s926_s12 = smov %s655_s13 }
 0x100   : > { %s927_s13 = smov %s929_s25  ;;  %18 = sbr.rel (!%p16_p5) target bundleno = 7 (0x7), region = 77 }
 0x107   :  { %338 = vsyncpa [#allocation3], 1 }
 0x108   :  { %340 = vsyncpa [#allocation3 + $0x1], 1 }
 0x109   :  { %341 = vsyncpa [#allocation6], 1 }
 0x10a   :  { %342 = vsyncpa [#allocation4], 1 }
 0x10b   :  { %344 = vsyncpa [#allocation4 + $0x1], 1 }

</bundles_post_ra>
